<compile_context>
chip_gen: v5e
topology: v5e:2x2
jax: 0.10.0
libtpu: 0.0.40
codegen_flags: <defaults>
</compile_context>

<pallas_src>
import math

import numpy as np
import jax
import jax.numpy as jnp
from jax.experimental import pallas as pl
from jax.experimental.pallas import tpu as pltpu


# ----------------------------------------------------------------------------
# Helpers
# ----------------------------------------------------------------------------
def _round_up(n, m):
    return ((n + m - 1) // m) * m


_MIB = 1 << 20
_TM_GROUPED_TARGET = 1024     # target row tile for the grouped kernel
_TN_LINEAR_1CORE = 8192       # target row tile for the linear kernel on 1-TC chips
_TN_LINEAR_2CORE = 2048       # target row tile for the linear kernel on 2-TC chips


def _tpu_geometry():
    """(vmem_capacity_bytes, num_tensorcores) with safe fallbacks."""
    vmem = 128 * _MIB
    num_cores = 0
    try:
        info = pltpu.get_tpu_info()
        vmem = int(getattr(info, "vmem_capacity_bytes", vmem) or vmem)
        num_cores = int(getattr(info, "num_tensorcores", 0) or 0)
    except Exception:
        pass
    if num_cores <= 0:
        # Heuristic: v7x has 64 MiB VMEM per TC and 2 TCs/chip; v5e/v6e have
        # 128 MiB and a single TC.
        num_cores = 2 if vmem <= 64 * _MIB else 1
    return vmem, num_cores


def _linear_footprint(tn, cinp, coutp):
    # double-buffered bf16 input + output blocks, one f32 accumulator tile,
    # double-buffered weight/shift.
    return (tn * cinp * 2 * 2 + tn * coutp * 2 * 2 + tn * coutp * 4
            + cinp * coutp * 2 * 2 + coutp * 4 * 2)


def _grouped_footprint(tm, ns, cgp, coutp):
    # double-buffered bf16 grouped input + output blocks, two f32 accumulator
    # tiles, double-buffered weight/shift.
    return (ns * tm * cgp * 2 * 2 + tm * coutp * 2 * 2 + tm * coutp * 4 * 2
            + cgp * coutp * 2 * 2 + coutp * 4 * 2)


def _pick_rows(n_rows, target, footprint_of_rows, budget, num_cores):
    """Row tile: multiple of 8, capped at `target`, shrunk to fit the VMEM
    budget, and (only on 2-TC chips) split so both TensorCores get a block."""
    n8 = _round_up(max(int(n_rows), 1), 8)
    t = max(8, min(_round_up(int(target), 8), n8))
    while t > 8 and footprint_of_rows(t) > budget:
        t = max(8, _round_up(t // 2, 8))
    if num_cores >= 2 and n8 > 8:
        t = min(t, max(8, _round_up(pl.cdiv(n8, num_cores), 8)))
    return t


def _vmem_limit_bytes(footprint, vmem_capacity):
    lim = max(int(footprint) * 2 + 4 * _MIB, 16 * _MIB)
    return int(min(lim, max(vmem_capacity - 8 * _MIB, 16 * _MIB)))


# ----------------------------------------------------------------------------
# Pallas kernels
# ----------------------------------------------------------------------------
def _linear_bias_relu_kernel(x_ref, w_ref, shift_ref, o_ref):
    # x_ref: (tn, CinP) bf16, w_ref: (CinP, CoutP) bf16 (BN scale pre-folded),
    # shift_ref: (1, CoutP) f32, o_ref: (tn, CoutP) bf16.
    y = jnp.dot(x_ref[...], w_ref[...], preferred_element_type=jnp.float32)
    o_ref[...] = jnp.maximum(y + shift_ref[...], 0.0).astype(o_ref.dtype)


def _grouped_linear_relu_pool_kernel(g_ref, w_ref, shift_ref, o_ref):
    # g_ref: (ns, tm, CgP) bf16, w_ref: (CgP, CoutP) bf16,
    # shift_ref: (1, CoutP) f32, o_ref: (tm, CoutP) bf16.
    # Max-pool over nsample neighbors as an unrolled VPU maximum over
    # per-neighbor (tm, CoutP) MXU results.  Two independent accumulators keep
    # the matmul pushes from waiting on the previous pop->max epilogue.
    ns = g_ref.shape[0]
    w = w_ref[...]
    acc0 = jnp.dot(g_ref[0], w, preferred_element_type=jnp.float32)
    if ns > 1:
        acc1 = jnp.dot(g_ref[1], w, preferred_element_type=jnp.float32)
    else:
        acc1 = acc0
    for k in range(2, ns):
        y = jnp.dot(g_ref[k], w, preferred_element_type=jnp.float32)
        if k % 2 == 0:
            acc0 = jnp.maximum(acc0, y)
        else:
            acc1 = jnp.maximum(acc1, y)
    acc = jnp.maximum(acc0, acc1)
    # shift is constant over neighbors and ReLU is monotone, so
    # relu(max_k(scale*y_k) + shift) == max_k(relu(scale*y_k + shift)).
    o_ref[...] = jnp.maximum(acc + shift_ref[...], 0.0).astype(o_ref.dtype)


def fused_linear_bn_relu(x_bf16_padded, w_bf16, shift):
    n, cinp = x_bf16_padded.shape
    coutp = w_bf16.shape[1]
    vmem, num_cores = _tpu_geometry()
    budget = min(vmem // 4, 24 * _MIB)
    target = _TN_LINEAR_2CORE if num_cores >= 2 else _TN_LINEAR_1CORE
    tn = _pick_rows(n, target, lambda t: _linear_footprint(t, cinp, coutp),
                    budget, num_cores)
    footprint = _linear_footprint(tn, cinp, coutp)
    ce = pl.CostEstimate(
        flops=int(2 * n * cinp * coutp),
        transcendentals=0,
        bytes_accessed=int(n * cinp * 2 + cinp * coutp * 2 + coutp * 4
                           + n * coutp * 2),
    )
    return pl.pallas_call(
        _linear_bias_relu_kernel,
        out_shape=jax.ShapeDtypeStruct((n, coutp), jnp.bfloat16),
        grid=(pl.cdiv(n, tn),),
        in_specs=[
            pl.BlockSpec((tn, cinp), lambda i: (i, 0)),
            pl.BlockSpec((cinp, coutp), lambda i: (0, 0)),
            pl.BlockSpec((1, coutp), lambda i: (0, 0)),
        ],
        out_specs=pl.BlockSpec((tn, coutp), lambda i: (i, 0)),
        compiler_params=pltpu.CompilerParams(
            dimension_semantics=("parallel",),
            vmem_limit_bytes=_vmem_limit_bytes(footprint, vmem)),
        cost_estimate=ce,
    )(x_bf16_padded, w_bf16, shift)


def fused_grouped_linear_bn_relu_pool(grouped_nmc, w_bf16, shift):
    # grouped_nmc: (nsample, M, CgP) bf16 device array.
    ns, m, cgp = grouped_nmc.shape
    coutp = w_bf16.shape[1]
    vmem, num_cores = _tpu_geometry()
    budget = min(vmem // 4, 24 * _MIB)
    tm = _pick_rows(m, _TM_GROUPED_TARGET,
                    lambda t: _grouped_footprint(t, ns, cgp, coutp),
                    budget, num_cores)
    footprint = _grouped_footprint(tm, ns, cgp, coutp)
    ce = pl.CostEstimate(
        flops=int(2 * m * ns * cgp * coutp),
        transcendentals=0,
        bytes_accessed=int(ns * m * cgp * 2 + cgp * coutp * 2 + coutp * 4
                           + m * coutp * 2),
    )
    return pl.pallas_call(
        _grouped_linear_relu_pool_kernel,
        out_shape=jax.ShapeDtypeStruct((m, coutp), jnp.bfloat16),
        grid=(pl.cdiv(m, tm),),
        in_specs=[
            pl.BlockSpec((ns, tm, cgp), lambda i: (0, i, 0)),
            pl.BlockSpec((cgp, coutp), lambda i: (0, 0)),
            pl.BlockSpec((1, coutp), lambda i: (0, 0)),
        ],
        out_specs=pl.BlockSpec((tm, coutp), lambda i: (i, 0)),
        compiler_params=pltpu.CompilerParams(
            dimension_semantics=("parallel",),
            vmem_limit_bytes=_vmem_limit_bytes(footprint, vmem)),
        cost_estimate=ce,
    )(grouped_nmc, w_bf16, shift)


# ----------------------------------------------------------------------------
# Host-side glue (data-dependent sequential argmax / gathers)
# ----------------------------------------------------------------------------
def furthest_point_sampling(p_np, o_np, n_o_np):
    # TODO(synk): pointops.furthestsampling is a sequential data-dependent
    # argmax/gather; implemented on host instead of in a Pallas kernel.
    idx_all = []
    start = 0
    prev_new = 0
    for b in range(len(o_np)):
        end = int(o_np[b])
        n_new = int(n_o_np[b]) - prev_new
        prev_new = int(n_o_np[b])
        pts = p_np[start:end]
        n = pts.shape[0]
        dist = np.full((n,), 1e10, dtype=np.float64)
        cur = 0
        sel = []
        for _ in range(n_new):
            sel.append(start + cur)
            d = np.sum((pts - pts[cur]) ** 2, axis=1)
            dist = np.minimum(dist, d)
            cur = int(np.argmax(dist))
        idx_all.append(np.asarray(sel, dtype=np.int32))
        start = end
    return np.concatenate(idx_all)


def knn_group_into(buf, m_offset, nsample, p_np, new_p_np, feat_np, o_np, new_o_np):
    # TODO(synk): pointops.queryandgroup (per-segment kNN + gather) is a
    # data-dependent gather; implemented on host (vectorized NumPy) and written
    # directly into the (nsample, M_total, CgP) bf16 buffer in its final
    # kernel layout (no concat / transpose / f32 H2D round trip).
    c = feat_np.shape[1]
    start, nstart = 0, 0
    for b in range(len(o_np)):
        end = int(o_np[b])
        nend = int(new_o_np[b])
        seg_p = p_np[start:end]
        seg_f = feat_np[start:end]
        seg_new = new_p_np[nstart:nend]
        if seg_new.shape[0] > 0:
            d2 = np.sum((seg_new[:, None, :] - seg_p[None, :, :]) ** 2, axis=-1)
            k = min(nsample, seg_p.shape[0])
            nn = np.argpartition(d2, k - 1, axis=1)[:, :k]
            if k < nsample:
                nn = np.concatenate(
                    [nn, np.repeat(nn[:, :1], nsample - k, axis=1)], axis=1)
            g_xyz = (seg_p[nn] - seg_new[:, None, :]).transpose(1, 0, 2)  # (ns, m_seg, 3)
            g_feat = seg_f[nn].transpose(1, 0, 2)                         # (ns, m_seg, c)
            lo, hi = m_offset + nstart, m_offset + nend
            buf[:, lo:hi, 0:3] = g_xyz     # use_xyz=True (relative xyz)
            buf[:, lo:hi, 3:3 + c] = g_feat
        start, nstart = end, nend


# ----------------------------------------------------------------------------
# Module
# ----------------------------------------------------------------------------
class TransitionDownPallas:
    def __init__(self, in_planes, out_planes, stride=1, nsample=16, key=None):
        self.stride = stride
        self.nsample = nsample
        self.in_planes = in_planes
        self.out_planes = out_planes
        in_dim = (3 + in_planes) if stride != 1 else in_planes
        self.in_dim = in_dim
        self.in_dim_p = _round_up(in_dim, 128)        # padded contraction dim
        self.cout_p = _round_up(out_planes, 128)      # lane-dense output width

        if key is None:
            key = jax.random.PRNGKey(0)
        kw, kg, kb, km, kv = jax.random.split(key, 5)

        # nn.Linear(in_dim, out_planes, bias=False): U(-1/sqrt(in_dim), 1/sqrt(in_dim)),
        # stored pre-transposed as (in_dim, out_planes).
        bound = 1.0 / math.sqrt(in_dim)
        w_t = jax.random.uniform(
            kw, (in_dim, out_planes), minval=-bound, maxval=bound, dtype=jnp.float32)

        # BatchNorm1d(out_planes), inference-mode affine with deterministic params.
        gamma = 1.0 + 0.1 * jax.random.normal(kg, (out_planes,), dtype=jnp.float32)
        beta = 0.05 * jax.random.normal(kb, (out_planes,), dtype=jnp.float32)
        running_mean = 0.1 * jax.random.normal(km, (out_planes,), dtype=jnp.float32)
        running_var = 1.0 + 0.1 * jax.random.uniform(kv, (out_planes,), dtype=jnp.float32)
        eps = 1e-5
        scale = gamma / jnp.sqrt(running_var + eps)
        shift = beta - running_mean * scale

        # Fold the BN scale into the weight.  Pad the contraction dim (zero rows)
        # so the x / grouped input can be lane-dense 128-wide, and pad Cout to a
        # multiple of 128 for unmasked lane-dense output stores.
        w_fused = w_t * scale[None, :]
        w_fused = jnp.pad(
            w_fused, ((0, self.in_dim_p - in_dim), (0, self.cout_p - out_planes)))
        self.w_bf16 = w_fused.astype(jnp.bfloat16)
        self.shift = jnp.pad(shift, (0, self.cout_p - out_planes)) \
                        .reshape(1, self.cout_p).astype(jnp.float32)

    def _maybe_slice(self, y):
        # Pick out_planes as a multiple of 128 to avoid this extra HBM pass.
        if self.cout_p != self.out_planes:
            y = y[:, :self.out_planes]
        return y

    def __call__(self, pxo):
        p, x, o = pxo
        if self.stride != 1:
            p_np = np.asarray(p, dtype=np.float32)
            x_np = np.asarray(x, dtype=np.float32)
            o_np = np.asarray(o, dtype=np.int32)

            new_stride = self.stride // 2  # module assumes even stride (e.g. 4)
            n_o = [int(o_np[0]) // new_stride]
            count = n_o[0]
            for i in range(1, o_np.shape[0]):
                count += (int(o_np[i]) - int(o_np[i - 1])) // new_stride
                n_o.append(count)
            n_o = np.asarray(n_o, dtype=np.int32)

            idx = furthest_point_sampling(p_np, o_np, n_o)

            # Split sampled indices per-segment into two halves (idx1 / idx2).
            n_o_aug = np.concatenate([np.array([0], dtype=np.int32), n_o])
            idx1_list, idx2_list, n_o_1, n_o_2 = [], [], [], []
            n1c, n2c = 0, 0
            for i in range(n_o.shape[0]):
                npoints = int(n_o_aug[i + 1] - n_o_aug[i])
                if npoints % 2 == 0:
                    np1, np2 = npoints // 2, npoints // 2
                else:
                    np1, np2 = npoints // 2 + 1, npoints // 2
                seg = idx[n_o_aug[i]:n_o_aug[i + 1]]
                idx1_list.append(seg[0:np1])
                idx2_list.append(seg[np1:np1 + np2])
                n1c += np1
                n2c += np2
                n_o_1.append(n1c)
                n_o_2.append(n2c)
            idx1 = np.concatenate(idx1_list)
            idx2 = np.concatenate(idx2_list)
            n_o_1 = np.asarray(n_o_1, dtype=np.int32)
            n_o_2 = np.asarray(n_o_2, dtype=np.int32)

            n_p = p_np[idx1]
            n_p2 = p_np[idx2]
            m1, m2 = n_p.shape[0], n_p2.shape[0]

            # Single (nsample, M1+M2, CgP) bf16 buffer in the kernel's final
            # layout; both halves go through one pallas_call.
            g_all = np.zeros((self.nsample, m1 + m2, self.in_dim_p),
                             dtype=jnp.bfloat16)
            knn_group_into(g_all, 0, self.nsample, p_np, n_p, x_np, o_np, n_o_1)
            knn_group_into(g_all, m1, self.nsample, p_np, n_p2, x_np, o_np, n_o_2)
            g_all = jnp.asarray(g_all)

            x_all = fused_grouped_linear_bn_relu_pool(g_all, self.w_bf16, self.shift)
            x_all = self._maybe_slice(x_all)
            x1_out = x_all[:m1]
            x2_out = x_all[m1:]

            return [jnp.asarray(n_p), x1_out, jnp.asarray(n_o_1),
                    jnp.asarray(n_p2), x2_out, jnp.asarray(n_o_2)]
        else:
            x_b = jnp.asarray(x).astype(jnp.bfloat16)
            if self.in_dim_p != self.in_dim:
                x_b = jnp.pad(x_b, ((0, 0), (0, self.in_dim_p - self.in_dim)))
            x_out = self._maybe_slice(
                fused_linear_bn_relu(x_b, self.w_bf16, self.shift))
            return [p, x_out, o, p, x_out, o]


# ----------------------------------------------------------------------------
# Demo
# ----------------------------------------------------------------------------
if __name__ == "__main__":
    key = jax.random.PRNGKey(0)
    kp, kx1, kx2, km1, km2 = jax.random.split(key, 5)

    N = 64
    out_planes = 128  # multiple of 128 -> no post-kernel channel slice
    p = jax.random.uniform(kp, (N, 3), dtype=jnp.float32)
    o = jnp.array([32, 64], dtype=jnp.int32)   # two batch segments of 32 points

    # Downsampling path (stride != 1): grouped Linear+BN -> MaxPool -> ReLU kernel.
    in_planes_down = 32
    x_down = jax.random.normal(kx1, (N, in_planes_down), dtype=jnp.float32)
    td_down = TransitionDownPallas(in_planes_down, out_planes, stride=4,
                                   nsample=8, key=km1)
    out_down = td_down((p, x_down, o))
    jax.block_until_ready(out_down[1])
    jax.block_until_ready(out_down[4])
    assert out_down[1].shape == (16, out_planes) and out_down[1].dtype == jnp.bfloat16
    assert out_down[4].shape == (16, out_planes)
    assert out_down[0].shape == (16, 3) and out_down[3].shape == (16, 3)

    # Identity-resolution path (stride == 1): Linear+BN+ReLU kernel.
    in_planes_same = 6
    x_same = jax.random.normal(kx2, (N, in_planes_same), dtype=jnp.float32)
    td_same = TransitionDownPallas(in_planes_same, out_planes, stride=1,
                                   nsample=8, key=km2)
    out_same = td_same((p, x_same, o))
    jax.block_until_ready(out_same[1])
    assert out_same[1].shape == (N, out_planes) and out_same[1].dtype == jnp.bfloat16
    assert bool(jnp.all(out_same[1] >= 0.0)) and bool(jnp.all(out_down[1] >= 0.0))

    print("KERNEL_OK")
</pallas_src>

<mosaic_0001>
module attributes {stable_mosaic.version = 11 : i64} {
  func.func @_grouped_linear_relu_pool_kernel(%arg0: i32, %arg1: memref<8x32x128xbf16, #tpu.memory_space<vmem>>, %arg2: memref<128x128xbf16, #tpu.memory_space<vmem>>, %arg3: memref<1x128xf32, #tpu.memory_space<vmem>>, %arg4: memref<32x128xbf16, #tpu.memory_space<vmem>>) attributes {dimension_semantics = [#tpu.dimension_semantics<parallel>], iteration_bounds = array<i64: 1>, scalar_prefetch = 0 : i64, scratch_operands = 0 : i64, tpu.core_type = #tpu.core_type<tc>, window_params = [{transform_indices = @transform_0, window_bounds = array<i64: 8, 32, 128>}, {pipeline_mode = #tpu.pipeline_mode<synchronous>, transform_indices = @transform_1, window_bounds = array<i64: 128, 128>}, {pipeline_mode = #tpu.pipeline_mode<synchronous>, transform_indices = @transform_2, window_bounds = array<i64: 1, 128>}, {transform_indices = @transform_3, window_bounds = array<i64: 32, 128>}]} {
    %c0 = arith.constant 0 : index
    %c0_0 = arith.constant 0 : index
    %0 = vector.load %arg2[%c0, %c0_0] : memref<128x128xbf16, #tpu.memory_space<vmem>>, vector<128x128xbf16>
    %c0_1 = arith.constant 0 : index
    %c0_2 = arith.constant 0 : index
    %c0_3 = arith.constant 0 : index
    %1 = vector.load %arg1[%c0_1, %c0_2, %c0_3] : memref<8x32x128xbf16, #tpu.memory_space<vmem>>, vector<1x32x128xbf16>
    %2 = vector.shape_cast %1 : vector<1x32x128xbf16> to vector<32x128xbf16>
    %cst = arith.constant dense<0.000000e+00> : vector<32x128xf32>
    %3 = tpu.matmul %2, %0, %cst {dimension_numbers = #tpu.dot_dimension_numbers<[1], [0], [0], [1], [0, 0, 1, 1], [], []>} : vector<32x128xbf16>, vector<128x128xbf16>, vector<32x128xf32> -> vector<32x128xf32>
    %c1 = arith.constant 1 : index
    %c0_4 = arith.constant 0 : index
    %c0_5 = arith.constant 0 : index
    %4 = vector.load %arg1[%c1, %c0_4, %c0_5] : memref<8x32x128xbf16, #tpu.memory_space<vmem>>, vector<1x32x128xbf16>
    %5 = vector.shape_cast %4 : vector<1x32x128xbf16> to vector<32x128xbf16>
    %cst_6 = arith.constant dense<0.000000e+00> : vector<32x128xf32>
    %6 = tpu.matmul %5, %0, %cst_6 {dimension_numbers = #tpu.dot_dimension_numbers<[1], [0], [0], [1], [0, 0, 1, 1], [], []>} : vector<32x128xbf16>, vector<128x128xbf16>, vector<32x128xf32> -> vector<32x128xf32>
    %c2 = arith.constant 2 : index
    %c0_7 = arith.constant 0 : index
    %c0_8 = arith.constant 0 : index
    %7 = vector.load %arg1[%c2, %c0_7, %c0_8] : memref<8x32x128xbf16, #tpu.memory_space<vmem>>, vector<1x32x128xbf16>
    %8 = vector.shape_cast %7 : vector<1x32x128xbf16> to vector<32x128xbf16>
    %cst_9 = arith.constant dense<0.000000e+00> : vector<32x128xf32>
    %9 = tpu.matmul %8, %0, %cst_9 {dimension_numbers = #tpu.dot_dimension_numbers<[1], [0], [0], [1], [0, 0, 1, 1], [], []>} : vector<32x128xbf16>, vector<128x128xbf16>, vector<32x128xf32> -> vector<32x128xf32>
    %10 = arith.maximumf %3, %9 : vector<32x128xf32>
    %c3 = arith.constant 3 : index
    %c0_10 = arith.constant 0 : index
    %c0_11 = arith.constant 0 : index
    %11 = vector.load %arg1[%c3, %c0_10, %c0_11] : memref<8x32x128xbf16, #tpu.memory_space<vmem>>, vector<1x32x128xbf16>
    %12 = vector.shape_cast %11 : vector<1x32x128xbf16> to vector<32x128xbf16>
    %cst_12 = arith.constant dense<0.000000e+00> : vector<32x128xf32>
    %13 = tpu.matmul %12, %0, %cst_12 {dimension_numbers = #tpu.dot_dimension_numbers<[1], [0], [0], [1], [0, 0, 1, 1], [], []>} : vector<32x128xbf16>, vector<128x128xbf16>, vector<32x128xf32> -> vector<32x128xf32>
    %14 = arith.maximumf %6, %13 : vector<32x128xf32>
    %c4 = arith.constant 4 : index
    %c0_13 = arith.constant 0 : index
    %c0_14 = arith.constant 0 : index
    %15 = vector.load %arg1[%c4, %c0_13, %c0_14] : memref<8x32x128xbf16, #tpu.memory_space<vmem>>, vector<1x32x128xbf16>
    %16 = vector.shape_cast %15 : vector<1x32x128xbf16> to vector<32x128xbf16>
    %cst_15 = arith.constant dense<0.000000e+00> : vector<32x128xf32>
    %17 = tpu.matmul %16, %0, %cst_15 {dimension_numbers = #tpu.dot_dimension_numbers<[1], [0], [0], [1], [0, 0, 1, 1], [], []>} : vector<32x128xbf16>, vector<128x128xbf16>, vector<32x128xf32> -> vector<32x128xf32>
    %18 = arith.maximumf %10, %17 : vector<32x128xf32>
    %c5 = arith.constant 5 : index
    %c0_16 = arith.constant 0 : index
    %c0_17 = arith.constant 0 : index
    %19 = vector.load %arg1[%c5, %c0_16, %c0_17] : memref<8x32x128xbf16, #tpu.memory_space<vmem>>, vector<1x32x128xbf16>
    %20 = vector.shape_cast %19 : vector<1x32x128xbf16> to vector<32x128xbf16>
    %cst_18 = arith.constant dense<0.000000e+00> : vector<32x128xf32>
    %21 = tpu.matmul %20, %0, %cst_18 {dimension_numbers = #tpu.dot_dimension_numbers<[1], [0], [0], [1], [0, 0, 1, 1], [], []>} : vector<32x128xbf16>, vector<128x128xbf16>, vector<32x128xf32> -> vector<32x128xf32>
    %22 = arith.maximumf %14, %21 : vector<32x128xf32>
    %c6 = arith.constant 6 : index
    %c0_19 = arith.constant 0 : index
    %c0_20 = arith.constant 0 : index
    %23 = vector.load %arg1[%c6, %c0_19, %c0_20] : memref<8x32x128xbf16, #tpu.memory_space<vmem>>, vector<1x32x128xbf16>
    %24 = vector.shape_cast %23 : vector<1x32x128xbf16> to vector<32x128xbf16>
    %cst_21 = arith.constant dense<0.000000e+00> : vector<32x128xf32>
    %25 = tpu.matmul %24, %0, %cst_21 {dimension_numbers = #tpu.dot_dimension_numbers<[1], [0], [0], [1], [0, 0, 1, 1], [], []>} : vector<32x128xbf16>, vector<128x128xbf16>, vector<32x128xf32> -> vector<32x128xf32>
    %26 = arith.maximumf %18, %25 : vector<32x128xf32>
    %c7 = arith.constant 7 : index
    %c0_22 = arith.constant 0 : index
    %c0_23 = arith.constant 0 : index
    %27 = vector.load %arg1[%c7, %c0_22, %c0_23] : memref<8x32x128xbf16, #tpu.memory_space<vmem>>, vector<1x32x128xbf16>
    %28 = vector.shape_cast %27 : vector<1x32x128xbf16> to vector<32x128xbf16>
    %cst_24 = arith.constant dense<0.000000e+00> : vector<32x128xf32>
    %29 = tpu.matmul %28, %0, %cst_24 {dimension_numbers = #tpu.dot_dimension_numbers<[1], [0], [0], [1], [0, 0, 1, 1], [], []>} : vector<32x128xbf16>, vector<128x128xbf16>, vector<32x128xf32> -> vector<32x128xf32>
    %30 = arith.maximumf %22, %29 : vector<32x128xf32>
    %31 = arith.maximumf %26, %30 : vector<32x128xf32>
    %c0_25 = arith.constant 0 : index
    %c0_26 = arith.constant 0 : index
    %32 = vector.load %arg3[%c0_25, %c0_26] : memref<1x128xf32, #tpu.memory_space<vmem>>, vector<1x128xf32>
    %33 = vector.broadcast %32 : vector<1x128xf32> to vector<32x128xf32>
    %34 = arith.addf %31, %33 : vector<32x128xf32>
    %cst_27 = arith.constant 0.000000e+00 : f32
    %35 = vector.broadcast %cst_27 : f32 to vector<32x128xf32>
    %36 = arith.maximumf %34, %35 : vector<32x128xf32>
    %37 = arith.truncf %36 : vector<32x128xf32> to vector<32x128xbf16>
    %c0_28 = arith.constant 0 : index
    %c0_29 = arith.constant 0 : index
    %38 = vector.load %arg4[%c0_28, %c0_29] : memref<32x128xbf16, #tpu.memory_space<vmem>>, vector<32x128xbf16>
    tpu.vector_store %arg4[%c0_28, %c0_29], %37 {strides = array<i32>} : memref<32x128xbf16, #tpu.memory_space<vmem>>, vector<32x128xbf16>,
    return
  }
  func.func @transform_0(%arg0: i32) -> (i32, i32, i32) {
    %c0_i32 = arith.constant 0 : i32
    %c0_i32_0 = arith.constant 0 : i32
    %c0_i32_1 = arith.constant 0 : i32
    return %c0_i32, %arg0, %c0_i32_0 : i32, i32, i32
  }
  func.func @transform_1(%arg0: i32) -> (i32, i32) {
    %c0_i32 = arith.constant 0 : i32
    %c0_i32_0 = arith.constant 0 : i32
    %c0_i32_1 = arith.constant 0 : i32
    return %c0_i32, %c0_i32_0 : i32, i32
  }
  func.func @transform_2(%arg0: i32) -> (i32, i32) {
    %c0_i32 = arith.constant 0 : i32
    %c0_i32_0 = arith.constant 0 : i32
    %c0_i32_1 = arith.constant 0 : i32
    return %c0_i32, %c0_i32_0 : i32, i32
  }
  func.func @transform_3(%arg0: i32) -> (i32, i32) {
    %c0_i32 = arith.constant 0 : i32
    %c0_i32_0 = arith.constant 0 : i32
    return %arg0, %c0_i32 : i32, i32
  }
}

</mosaic_0001>

<bundles_post_ra>
// kernel: tpu_custom_call.1
= control target key start
LH: loop header
LB: loop body
LE: loop exit
PB: predicated region body
PF: predicated region fallthrough
CT: control target
= control target key end

     0   :  { %8 = vsyncpa [#allocation3], 0  ;;  %s727_s0 = inlined_call_operand.hbm [shape: bf16[8,32,128], index: 0, kind: input, shape index: {}]   ;;  %s728_s1 = inlined_call_operand.hbm [shape: bf16[128,128], index: 1, kind: input, shape index: {}]   ;;  %s729_s2 = inlined_call_operand.vmem [shape: f32[1,128], index: 2, kind: input, shape index: {}]   ;;  %s730_s3 = inlined_call_operand.hbm [shape: bf16[32,128], index: 3, kind: output, shape index: {}]  }
   0x1   :  { %9 = vsyncpa [#allocation6], 0 }
   0x2   :  { %10 = vsyncpa [#allocation4], 0  ;;  %s15_s14 = sshll.u32 %s727_s0, 4  ;;  %s681_s15 = smov [#allocation2]   ;;  %s16_s14 = int_to_ptr.hbm [resolvable:$true] %s15_s14 }
   0x3   :  { %s17_s16 = sshll.u32 %s681_s15, 4  ;;  %s28_s19 = sshll.u32 %s728_s1, 4  ;;  %s18_s16 = int_to_ptr.vmem [resolvable:$true] %s17_s16  ;;  %s29_s19 = int_to_ptr.hbm [resolvable:$true] %s28_s19 }
   0x4   :  { %s682_s20 = smov 64   ;;  %s683_s21 = smov 4  }
   0x5   :  { %23 = dma.hbm_to_vmem [thread:$0]  %s16_s14, 2048, %s18_s16, [#allocation3], %s682_s20, %s682_s20, %s683_s21  }
   0x6   :  { %s684_s22 = smov [#allocation5]  }
   0x7   :  { %s30_s23 = sshll.u32 %s684_s22, 4  ;;  %s31_s23 = int_to_ptr.vmem [resolvable:$true] %s30_s23 }
   0x8   :  { %36 = dma.hbm_to_vmem [thread:$0]  %s29_s19, 1024, %s31_s23, [#allocation6], %s682_s20, %s682_s20, %s683_s21  }
   0x9   :  { %675 = dma.done.wait [#allocation3], 2048  }
   0xa   :  { %676 = vsyncadd [#allocation3], 4294965248 }
   0xb   :  { %677 = dma.done.wait [#allocation6], 1024  }
   0xc   :  { %678 = vsyncadd [#allocation6], 4294966272  ;;  %v569_v0 = vld [vmem:[#allocation5 + $0x38] sm:$0xff]  ;;  %v568_v1 = vld [vmem:[#allocation5 + $0x30] sm:$0xff]  ;;  %s452_s27 = sshll.u32 %s730_s3, 4  ;;  %s453_s27 = int_to_ptr.hbm [resolvable:$true] %s452_s27 }
   0xd   :  { %127 = vmatpush.bf16.msra.mxu0 %v569_v0  ;;  %163 = vmatpush.bf16.msra.mxu1 %v569_v0  ;;  %v567_v2 = vld [vmem:[#allocation5 + $0x28] sm:$0xff]  ;;  %v566_v3 = vld [vmem:[#allocation5 + $0x20] sm:$0xff]  ;;  %v565_v4 = vld [vmem:[#allocation5 + $0x18] sm:$0xff] }
   0xe   :  { %199 = vmatpush.bf16.msra.mxu2 %v569_v0  ;;  %239 = vmatpush.bf16.msra.mxu3 %v569_v0  ;;  %v564_v5 = vld [vmem:[#allocation5 + $0x10] sm:$0xff]  ;;  %v563_v6 = vld [vmem:[#allocation5 + $0x8] sm:$0xff]  ;;  %v562_v7 = vld [vmem:[#allocation5] sm:$0xff] }
   0xf   :  { %v570_v8 = vld [vmem:[#allocation2] sm:$0xff]  ;;  %v572_v9 = vld [vmem:[#allocation2 + $0x10] sm:$0xff]  ;;  %v571_v12 = vld [vmem:[#allocation2 + $0x8] sm:$0xff] }
  0x10   :  { %v574_v10 = vld [vmem:[#allocation2 + $0x20] sm:$0xff]  ;;  %v576_v11 = vld [vmem:[#allocation2 + $0x30] sm:$0xff]  ;;  %v573_v13 = vld [vmem:[#allocation2 + $0x18] sm:$0xff] }
  0x11   :  { %128 = vmatpush.bf16.msra.mxu0 %v568_v1  ;;  %164 = vmatpush.bf16.msra.mxu1 %v568_v1  ;;  %v575_v14 = vld [vmem:[#allocation2 + $0x28] sm:$0xff]  ;;  %v577_v15 = vld [vmem:[#allocation2 + $0x38] sm:$0xff]  ;;  %v578_v16 = vld [vmem:[#allocation2 + $0x40] sm:$0xff] }
  0x12   :  { %200 = vmatpush.bf16.msra.mxu2 %v568_v1  ;;  %240 = vmatpush.bf16.msra.mxu3 %v568_v1  ;;  %v580_v17 = vld [vmem:[#allocation2 + $0x50] sm:$0xff]  ;;  %v582_v18 = vld [vmem:[#allocation2 + $0x60] sm:$0xff]  ;;  %v579_v20 = vld [vmem:[#allocation2 + $0x48] sm:$0xff] }
  0x13   :  { %v584_v19 = vld [vmem:[#allocation2 + $0x70] sm:$0xff]  ;;  %v581_v21 = vld [vmem:[#allocation2 + $0x58] sm:$0xff]  ;;  %v583_v22 = vld [vmem:[#allocation2 + $0x68] sm:$0xff] }
  0x14   :  { %v585_v23 = vld [vmem:[#allocation2 + $0x78] sm:$0xff]  ;;  %v602_v55 = vld [vmem:[%s729_s2] ss:$0 sm:$0xff]  ;;  %s685_s2 = smov [#allocation7]  }
  0x15   :  { %129 = vmatpush.bf16.msra.mxu0 %v567_v2  ;;  %165 = vmatpush.bf16.msra.mxu1 %v567_v2  ;;  %s450_s24 = sshll.u32 %s685_s2, 4  ;;  %s451_s24 = int_to_ptr.vmem [resolvable:$true] %s450_s24 }
  0x16   :  { %201 = vmatpush.bf16.msra.mxu2 %v567_v2  ;;  %241 = vmatpush.bf16.msra.mxu3 %v567_v2 }
  0x19   :  { %130 = vmatpush.bf16.msra.mxu0 %v566_v3  ;;  %166 = vmatpush.bf16.msra.mxu1 %v566_v3 }
  0x1a   :  { %202 = vmatpush.bf16.msra.mxu2 %v566_v3  ;;  %242 = vmatpush.bf16.msra.mxu3 %v566_v3 }
  0x1d   :  { %131 = vmatpush.bf16.msra.mxu0 %v565_v4  ;;  %167 = vmatpush.bf16.msra.mxu1 %v565_v4 }
  0x1e   :  { %203 = vmatpush.bf16.msra.mxu2 %v565_v4  ;;  %243 = vmatpush.bf16.msra.mxu3 %v565_v4 }
  0x21   :  { %132 = vmatpush.bf16.msra.mxu0 %v564_v5  ;;  %168 = vmatpush.bf16.msra.mxu1 %v564_v5 }
  0x22   :  { %204 = vmatpush.bf16.msra.mxu2 %v564_v5  ;;  %244 = vmatpush.bf16.msra.mxu3 %v564_v5 }
  0x25   :  { %133 = vmatpush.bf16.msra.mxu0 %v563_v6  ;;  %169 = vmatpush.bf16.msra.mxu1 %v563_v6 }
  0x26   :  { %205 = vmatpush.bf16.msra.mxu2 %v563_v6  ;;  %245 = vmatpush.bf16.msra.mxu3 %v563_v6 }
  0x29   :  { %134 = vmatpush.bf16.msra.mxu0 %v562_v7  ;;  %170 = vmatpush.bf16.msra.mxu1 %v562_v7 }
  0x2a   :  { %206 = vmatpush.bf16.msra.mxu2 %v562_v7  ;;  %246 = vmatpush.bf16.msra.mxu3 %v562_v7 }
  0x2c   :  { %135 = vmatmul.bf16.vlgmr.msra.gmra.mxu0 %v570_v8  ;;  %171 = vmatmul.bf16.vlgmr.msra.gmra.mxu1 %v572_v9 }
  0x2d   :  { %207 = vmatmul.bf16.vlgmr.msra.gmra.mxu2 %v574_v10  ;;  %247 = vmatmul.bf16.vlgmr.msra.gmra.mxu3 %v576_v11 }
  0x2e   :  { %359 = vmatpush.bf16.msrb.mxu2 %v569_v0  ;;  %399 = vmatpush.bf16.msrb.mxu3 %v569_v0 }
  0x2f   :  { %279 = vmatpush.bf16.msrb.mxu0 %v569_v0  ;;  %319 = vmatpush.bf16.msrb.mxu1 %v569_v0 }
  0x32   :  { %360 = vmatpush.bf16.msrb.mxu2 %v568_v1  ;;  %400 = vmatpush.bf16.msrb.mxu3 %v568_v1 }
  0x33   :  { %280 = vmatpush.bf16.msrb.mxu0 %v568_v1  ;;  %320 = vmatpush.bf16.msrb.mxu1 %v568_v1 }
  0x36   :  { %361 = vmatpush.bf16.msrb.mxu2 %v567_v2  ;;  %401 = vmatpush.bf16.msrb.mxu3 %v567_v2 }
  0x37   :  { %281 = vmatpush.bf16.msrb.mxu0 %v567_v2  ;;  %321 = vmatpush.bf16.msrb.mxu1 %v567_v2 }
  0x3a   :  { %362 = vmatpush.bf16.msrb.mxu2 %v566_v3  ;;  %402 = vmatpush.bf16.msrb.mxu3 %v566_v3 }
  0x3b   :  { %282 = vmatpush.bf16.msrb.mxu0 %v566_v3  ;;  %322 = vmatpush.bf16.msrb.mxu1 %v566_v3 }
  0x3c   :  { %140 = vmatmul.bf16.gmra.mxu0 %v571_v12  ;;  %176 = vmatmul.bf16.gmra.mxu1 %v573_v13 }
  0x3d   :  { %212 = vmatmul.bf16.gmra.mxu2 %v575_v14  ;;  %252 = vmatmul.bf16.gmra.mxu3 %v577_v15 }
  0x3e   :  { %363 = vmatpush.bf16.msrb.mxu2 %v565_v4  ;;  %403 = vmatpush.bf16.msrb.mxu3 %v565_v4 }
  0x3f   :  { %283 = vmatpush.bf16.msrb.mxu0 %v565_v4  ;;  %323 = vmatpush.bf16.msrb.mxu1 %v565_v4 }
  0x42   :  { %364 = vmatpush.bf16.msrb.mxu2 %v564_v5  ;;  %404 = vmatpush.bf16.msrb.mxu3 %v564_v5 }
  0x43   :  { %284 = vmatpush.bf16.msrb.mxu0 %v564_v5  ;;  %324 = vmatpush.bf16.msrb.mxu1 %v564_v5 }
  0x46   :  { %365 = vmatpush.bf16.msrb.mxu2 %v563_v6  ;;  %405 = vmatpush.bf16.msrb.mxu3 %v563_v6 }
  0x47   :  { %285 = vmatpush.bf16.msrb.mxu0 %v563_v6  ;;  %325 = vmatpush.bf16.msrb.mxu1 %v563_v6 }
  0x4a   :  { %366 = vmatpush.bf16.msrb.mxu2 %v562_v7  ;;  %406 = vmatpush.bf16.msrb.mxu3 %v562_v7 }
  0x4b   :  { %286 = vmatpush.bf16.msrb.mxu0 %v562_v7  ;;  %326 = vmatpush.bf16.msrb.mxu1 %v562_v7 }
  0x4d   :  { %367 = vmatmul.bf16.vlgmr.msrb.gmra.mxu2 %v582_v18  ;;  %407 = vmatmul.bf16.vlgmr.msrb.gmra.mxu3 %v584_v19 }
  0x4e   :  { %287 = vmatmul.bf16.vlgmr.msrb.gmra.mxu0 %v578_v16  ;;  %327 = vmatmul.bf16.vlgmr.msrb.gmra.mxu1 %v580_v17 }
  0x5d   :  { %372 = vmatmul.bf16.gmra.mxu2 %v583_v22  ;;  %412 = vmatmul.bf16.gmra.mxu3 %v585_v23 }
  0x5e   :  { %292 = vmatmul.bf16.gmra.mxu0 %v579_v20  ;;  %332 = vmatmul.bf16.gmra.mxu1 %v581_v21 }
  0xa9   :  { %v136_v24 = vpop.f32.mrf.mxu0  ;;  %v172_v25 = vpop.f32.mrf.mxu1 }
  0xb0   :  { %v208_v26 = vpop.f32.mrf.mxu2  ;;  %v248_v27 = vpop.f32.mrf.mxu3 }
  0xb1   :  { %v138_v28 = vpop.f32.mrf.mxu0  ;;  %v174_v29 = vpop.f32.mrf.mxu1  ;;  %v218_v42 = vmax.f32 %v136_v24, %v208_v26  ;;  %v258_v43 = vmax.f32 %v172_v25, %v248_v27 }
  0xb8   :  { %v210_v30 = vpop.f32.mrf.mxu2  ;;  %v250_v31 = vpop.f32.mrf.mxu3 }
  0xb9   :  { %v141_v32 = vpop.f32.mrf.mxu0  ;;  %v177_v33 = vpop.f32.mrf.mxu1  ;;  %v219_v52 = vmax.f32 %v138_v28, %v210_v30  ;;  %v259_v53 = vmax.f32 %v174_v29, %v250_v31 }
  0xc0   :  { %v213_v34 = vpop.f32.mrf.mxu2  ;;  %v253_v35 = vpop.f32.mrf.mxu3 }
  0xc1   :  { %v143_v36 = vpop.f32.mrf.mxu0  ;;  %v179_v37 = vpop.f32.mrf.mxu1  ;;  %v220_v3 = vmax.f32 %v141_v32, %v213_v34  ;;  %v260_v4 = vmax.f32 %v177_v33, %v253_v35 }
  0xc8   :  { %v215_v38 = vpop.f32.mrf.mxu2  ;;  %v255_v39 = vpop.f32.mrf.mxu3 }
  0xc9   :  { %v221_v16 = vmax.f32 %v143_v36, %v215_v38  ;;  %v261_v17 = vmax.f32 %v179_v37, %v255_v39 }
  0xcb   :  { %v288_v40 = vpop.f32.mrf.mxu0  ;;  %v328_v41 = vpop.f32.mrf.mxu1 }
  0xcc   :  { %v298_v46 = vmax.f32 %v218_v42, %v288_v40  ;;  %v338_v47 = vmax.f32 %v258_v43, %v328_v41 }
  0xd0   :  { %v368_v44 = vpop.f32.mrf.mxu2  ;;  %v408_v45 = vpop.f32.mrf.mxu3 }
  0xd1   :  { %v378_v50 = vmax.f32 %v298_v46, %v368_v44  ;;  %v418_v51 = vmax.f32 %v338_v47, %v408_v45 }
  0xd3   :  { %v290_v48 = vpop.f32.mrf.mxu0  ;;  %v330_v49 = vpop.f32.mrf.mxu1  ;;  %v422_v54 = vmax.f32 %v378_v50, %v418_v51 }
  0xd4   :  { %v299_v56 = vmax.f32 %v219_v52, %v290_v48  ;;  %v339_v57 = vmax.f32 %v259_v53, %v330_v49 }
  0xd5   :  { %v430_v0 = vadd.f32 %v602_v55, %v422_v54 }
  0xd7   :  { %v434_v5 = vmax.f32 %v430_v0, 0.0 }
  0xd8   :  { %v370_v58 = vpop.f32.mrf.mxu2  ;;  %v410_v59 = vpop.f32.mrf.mxu3 }
  0xd9   :  { %v379_v60 = vmax.f32 %v299_v56, %v370_v58  ;;  %v419_v61 = vmax.f32 %v339_v57, %v410_v59 }
  0xdb   :  { %v293_v62 = vpop.f32.mrf.mxu0  ;;  %v333_v63 = vpop.f32.mrf.mxu1  ;;  %v423_v1 = vmax.f32 %v379_v60, %v419_v61 }
  0xdc   :  { %v300_v10 = vmax.f32 %v220_v3, %v293_v62  ;;  %v340_v11 = vmax.f32 %v260_v4, %v333_v63 }
  0xdd   :  { %v431_v2 = vadd.f32 %v602_v55, %v423_v1 }
  0xdf   :  { %v435_v6 = vmax.f32 %v431_v2, 0.0 }
  0xe0   :  { %v373_v7 = vpop.f32.mrf.mxu2  ;;  %v413_v8 = vpop.f32.mrf.mxu3 }
  0xe1   :  { %v589_v9 = vpack.c.bf16 %v435_v6, %v434_v5  ;;  %v380_v12 = vmax.f32 %v300_v10, %v373_v7  ;;  %v420_v13 = vmax.f32 %v340_v11, %v413_v8 }
  0xe3   :  { %590 = vst [vmem:[#allocation7] sm:$0xff] %v589_v9   ;;  %v295_v14 = vpop.f32.mrf.mxu0  ;;  %v335_v15 = vpop.f32.mrf.mxu1  ;;  %v424_v18 = vmax.f32 %v380_v12, %v420_v13 }
  0xe4   :  { %v301_v19 = vmax.f32 %v221_v16, %v295_v14  ;;  %v341_v20 = vmax.f32 %v261_v17, %v335_v15 }
  0xe5   :  { %v432_v25 = vadd.f32 %v602_v55, %v424_v18 }
  0xe7   :  { %v436_v28 = vmax.f32 %v432_v25, 0.0 }
  0xe8   :  { %v375_v21 = vpop.f32.mrf.mxu2  ;;  %v415_v22 = vpop.f32.mrf.mxu3 }
  0xe9   :  { %v381_v23 = vmax.f32 %v301_v19, %v375_v21  ;;  %v421_v24 = vmax.f32 %v341_v20, %v415_v22 }
  0xeb   :  { %v425_v26 = vmax.f32 %v381_v23, %v421_v24 }
  0xed   :  { %v433_v27 = vadd.f32 %v602_v55, %v425_v26 }
  0xef   :  { %v437_v29 = vmax.f32 %v433_v27, 0.0 }
  0xf1   :  { %v594_v30 = vpack.c.bf16 %v437_v29, %v436_v28 }
  0xf3   :  { %596 = vst [vmem:[#allocation7 + $0x8] sm:$0xff] %v594_v30  }
  0xf4   :  { %458 = dma.vmem_to_hbm [thread:$0]  %s451_s24, 256, %s453_s27, [#allocation4], %s682_s20, %s682_s20, %s683_s21  }
  0xf5   :  { %679 = dma.done.wait [#allocation4], 256  }
  0xf6   :  { %680 = vsyncadd [#allocation4], 4294967040 }
  0xf7   :  { %463 = vsyncpa [#allocation3], 1 }
  0xf8   :  { %464 = vsyncpa [#allocation6], 1 }
  0xf9   :  { %465 = vsyncpa [#allocation4], 1 }

</bundles_post_ra>
